<compile_context>
chip_gen: v5e
topology: v5e:2x2
jax: 0.10.0
libtpu: 0.0.40
codegen_flags: <defaults>
</compile_context>

<pallas_src>
import jax
import jax.numpy as jnp
from jax.experimental import pallas as pl
from jax.experimental.pallas import tpu as pltpu

LN_EPS = 1e-5  # torch.nn.LayerNorm default


# ----------------------------------------------------------------------------
# Helpers
# ----------------------------------------------------------------------------
def _round_up(x, m):
    return (x + m - 1) // m * m


def _cdiv(a, b):
    return -(-a // b)


def _sublane_multiple(dtype):
    # (8,128) vreg tile is in 32-bit units; packed dtypes need 8 * (4/itemsize)
    # rows per tile: 8 for f32, 16 for bf16, 32 for int8/fp8.
    return max(8, 32 // jnp.dtype(dtype).itemsize)


def _vmem_budget_bytes():
    cap = 64 * 1024 * 1024
    try:
        info = pltpu.get_tpu_info()
        cap = int(getattr(info, "vmem_capacity_bytes", cap))
    except Exception:
        pass
    # ~80% of physical VMEM: ~51 MiB on v7x, ~102 MiB on v5e/v6e. Leaves
    # headroom for compiler-managed scratch / semaphores.
    return int(cap * 0.8)


def _ln_residual(x, y, gamma, beta, out_dtype):
    """Two-pass LayerNorm over the last axis + residual add, all in f32."""
    d = y.shape[-1]
    inv_d = jnp.float32(1.0 / d)
    mean = jnp.sum(y, axis=-1, keepdims=True) * inv_d
    c = y - mean
    var = jnp.sum(c * c, axis=-1, keepdims=True) * inv_d
    y_hat = c * jax.lax.rsqrt(var + jnp.float32(LN_EPS))
    ln = y_hat * gamma + beta
    return (x.astype(jnp.float32) + ln).astype(out_dtype)


# ----------------------------------------------------------------------------
# Kernels
# ----------------------------------------------------------------------------
def resmlp_kernel(x_ref, w1_ref, b1_ref, w2_ref, b2_ref, g_ref, beta_ref, o_ref):
    """Resident-weight path: one grid axis over row tiles."""
    x = x_ref[...]  # native dtype -> MXU bf16 path when x is bf16

    # Linear(dim -> bn) + ReLU   (MXU, f32 accumulation; biases already f32)
    h = jnp.dot(x, w1_ref[...], preferred_element_type=jnp.float32)
    h = jnp.maximum(h + b1_ref[...], 0.0)

    # Linear(bn -> dim)
    y = jnp.dot(h.astype(w2_ref.dtype), w2_ref[...],
                preferred_element_type=jnp.float32)
    y = y + b2_ref[...]

    o_ref[...] = _ln_residual(x, y, g_ref[...], beta_ref[...], o_ref.dtype)


def resmlp_bn_tiled_kernel(x_ref, w1_ref, b1_ref, w2_ref, b2_ref, g_ref,
                           beta_ref, o_ref, acc_ref):
    """Large-weight path: grid (row tiles, bn tiles) with f32 accumulator."""
    k = pl.program_id(1)

    @pl.when(k == 0)
    def _():
        acc_ref[...] = jnp.zeros_like(acc_ref)

    x = x_ref[...]  # same block index across k -> stays resident in VMEM

    h = jnp.dot(x, w1_ref[...], preferred_element_type=jnp.float32)
    h = jnp.maximum(h + b1_ref[...], 0.0)
    acc_ref[...] += jnp.dot(h.astype(w2_ref.dtype), w2_ref[...],
                            preferred_element_type=jnp.float32)

    @pl.when(k == pl.num_programs(1) - 1)
    def _():
        y = acc_ref[...] + b2_ref[...]
        o_ref[...] = _ln_residual(x, y, g_ref[...], beta_ref[...], o_ref.dtype)


# ----------------------------------------------------------------------------
# Wrapper
# ----------------------------------------------------------------------------
def resmlp_forward(x, params, *, tm_max=1024, force_bn_tile=None):
    """x: (..., dim). Applies the ResMLP block row-wise via a Pallas kernel."""
    w1, b1, w2, b2, gamma, beta = params
    dim = x.shape[-1]
    bn = w1.shape[1]
    orig_shape = x.shape

    x2d = x.reshape(-1, dim)
    n_rows = x2d.shape[0]

    # Pre-cast weights to the activation dtype (bf16 stays bf16 -> halves the
    # resident weight bytes and feeds the native MXU path). Biases / LN params
    # are tiny; keep them f32 so the kernel never re-converts.
    compute_dtype = x.dtype
    w1c = w1.astype(compute_dtype)
    w2c = w2.astype(compute_dtype)
    b1_2d = b1.reshape(1, bn).astype(jnp.float32)
    b2_2d = b2.reshape(1, dim).astype(jnp.float32)
    g_2d = gamma.reshape(1, dim).astype(jnp.float32)
    beta_2d = beta.reshape(1, dim).astype(jnp.float32)

    sub = _sublane_multiple(compute_dtype)
    budget = _vmem_budget_bytes()
    wbytes = jnp.dtype(compute_dtype).itemsize
    xbytes = jnp.dtype(x.dtype).itemsize

    single_buf_ok = hasattr(pl, "Buffered")
    n_buf_const = 1 if single_buf_ok else 2

    weight_bytes_full = 2 * dim * bn * wbytes          # W1 + W2 (one buffer)
    small_const_bytes = (bn + 3 * dim) * 4 * 2         # biases + LN (generous)

    def per_row_bytes(bn_tile):
        # Double-buffered x & out tiles + f32 intermediates (h: bn_tile,
        # y / centered / normalized: ~3*dim — conservative).
        return 2 * 2 * dim * xbytes + (bn_tile + 3 * dim) * 4

    # ---- decide whether bn (weight) tiling is needed --------------------
    resident_weights_full = n_buf_const * weight_bytes_full
    need_bn_tiling = (
        resident_weights_full + small_const_bytes + 2 * sub * per_row_bytes(bn)
        > budget
    ) or resident_weights_full > budget // 2

    bn_tile = None
    if force_bn_tile is not None:
        assert bn % force_bn_tile == 0 and force_bn_tile % 128 == 0
        bn_tile = force_bn_tile
    elif need_bn_tiling and bn % 128 == 0:
        # Largest 128-multiple divisor of bn whose double-buffered W1/W2 tiles
        # stay within ~1/3 of the budget.
        bn_tile = 128
        cand = 256
        while cand <= bn:
            if bn % cand == 0 and 2 * 2 * dim * cand * wbytes <= budget // 3:
                bn_tile = cand
            cand += 128
    # TODO(synk): if weights exceed VMEM and bn is not a multiple of 128, a
    # masked bn tile (padding leaks through the k-sum otherwise) or an
    # additional dim-axis tile would be needed; we fall back to full residency.

    # ---- row-tile size from the VMEM budget -----------------------------
    if bn_tile is None:
        resident_const = n_buf_const * weight_bytes_full + small_const_bytes
        per_row = per_row_bytes(bn)
    else:
        resident_const = (2 * (2 * dim * bn_tile * wbytes + bn_tile * 4)
                          + n_buf_const * small_const_bytes)
        per_row = per_row_bytes(bn_tile) + dim * 4  # + f32 accumulator scratch

    avail = max(budget - resident_const, 0)
    tm_budget = max(sub, (avail // per_row) // sub * sub)
    tm = min(tm_budget, tm_max, _round_up(n_rows, sub))
    tm = max(sub, (tm // sub) * sub)

    grid_m = _cdiv(n_rows, tm)
    # Keep both v7x TensorCores busy: >= 2 grid steps, preferably an even count.
    if grid_m == 1 and n_rows >= 2 * sub:
        tm = _round_up(_cdiv(n_rows, 2), sub)
        grid_m = _cdiv(n_rows, tm)
    elif grid_m > 1 and grid_m % 2 == 1:
        tm_try = max(sub, _round_up(_cdiv(n_rows, grid_m + 1), sub))
        if _cdiv(n_rows, tm_try) % 2 == 0:
            tm = tm_try
            grid_m = _cdiv(n_rows, tm)

    buffered_one = {"pipeline_mode": pl.Buffered(1)} if single_buf_ok else {}

    if bn_tile is None:
        # -------- resident-weight path: grid over row tiles only ---------
        def const_spec(shape):
            return pl.BlockSpec(shape, lambda i: (0, 0), **buffered_one)

        out = pl.pallas_call(
            resmlp_kernel,
            out_shape=jax.ShapeDtypeStruct((n_rows, dim), x.dtype),
            grid_spec=pltpu.PrefetchScalarGridSpec(
                num_scalar_prefetch=0,
                grid=(grid_m,),
                in_specs=[
                    pl.BlockSpec((tm, dim), lambda i: (i, 0)),  # x rows
                    const_spec((dim, bn)),                      # W1 (full)
                    const_spec((1, bn)),                        # b1
                    const_spec((bn, dim)),                      # W2 (full)
                    const_spec((1, dim)),                       # b2
                    const_spec((1, dim)),                       # LN gamma
                    const_spec((1, dim)),                       # LN beta
                ],
                out_specs=pl.BlockSpec((tm, dim), lambda i: (i, 0)),
            ),
            compiler_params=pltpu.CompilerParams(
                dimension_semantics=("parallel",),
                vmem_limit_bytes=budget,
            ),
        )(x2d, w1c, b1_2d, w2c, b2_2d, g_2d, beta_2d)
    else:
        # -------- bn-tiled path: grid (row tiles, bn tiles) --------------
        grid_k = bn // bn_tile

        def const_spec2(shape):
            return pl.BlockSpec(shape, lambda i, k: (0, 0), **buffered_one)

        out = pl.pallas_call(
            resmlp_bn_tiled_kernel,
            out_shape=jax.ShapeDtypeStruct((n_rows, dim), x.dtype),
            grid_spec=pltpu.PrefetchScalarGridSpec(
                num_scalar_prefetch=0,
                grid=(grid_m, grid_k),
                in_specs=[
                    pl.BlockSpec((tm, dim), lambda i, k: (i, 0)),       # x rows
                    pl.BlockSpec((dim, bn_tile), lambda i, k: (0, k)),  # W1 cols
                    pl.BlockSpec((1, bn_tile), lambda i, k: (0, k)),    # b1
                    pl.BlockSpec((bn_tile, dim), lambda i, k: (k, 0)),  # W2 rows
                    const_spec2((1, dim)),                              # b2
                    const_spec2((1, dim)),                              # gamma
                    const_spec2((1, dim)),                              # beta
                ],
                out_specs=pl.BlockSpec((tm, dim), lambda i, k: (i, 0)),
                scratch_shapes=[pltpu.VMEM((tm, dim), jnp.float32)],
            ),
            compiler_params=pltpu.CompilerParams(
                dimension_semantics=("parallel", "arbitrary"),
                vmem_limit_bytes=budget,
            ),
        )(x2d, w1c, b1_2d, w2c, b2_2d, g_2d, beta_2d)

    return out.reshape(orig_shape)


# ----------------------------------------------------------------------------
# Params / reference
# ----------------------------------------------------------------------------
def init_params(key, dim, dtype=jnp.float32):
    """Deterministic synthetic init matching the PyTorch module's shapes."""
    # Note: on v6e/v7x a bn that's a multiple of 256 fills the 256-wide MXU;
    # the module spec fixes bn = dim // 2, so we keep that.
    bn = dim // 2
    k1, k2, k3, k4 = jax.random.split(key, 4)
    lim1 = 1.0 / jnp.sqrt(dim)
    lim2 = 1.0 / jnp.sqrt(bn)
    w1 = jax.random.uniform(k1, (dim, bn), dtype, -lim1, lim1)
    b1 = jax.random.uniform(k2, (bn,), dtype, -lim1, lim1)
    w2 = jax.random.uniform(k3, (bn, dim), dtype, -lim2, lim2)
    b2 = jax.random.uniform(k4, (dim,), dtype, -lim2, lim2)
    gamma = jnp.ones((dim,), dtype)   # LayerNorm weight
    beta = jnp.zeros((dim,), dtype)   # LayerNorm bias
    return (w1, b1, w2, b2, gamma, beta)


def resmlp_reference(x, params):
    """Plain-JAX reference for correctness checking."""
    w1, b1, w2, b2, gamma, beta = params
    h = jnp.maximum(x @ w1 + b1, 0.0)
    y = h @ w2 + b2
    mean = jnp.mean(y, axis=-1, keepdims=True)
    var = jnp.mean((y - mean) ** 2, axis=-1, keepdims=True)
    ln = (y - mean) / jnp.sqrt(var + LN_EPS) * gamma + beta
    return x + ln


if __name__ == "__main__":
    key = jax.random.PRNGKey(0)
    k_x, k_p, k_x2, k_p2 = jax.random.split(key, 4)

    # Small but lane-dense: dim = 256 (multiple of 128), bn = 128.
    batch, seq, dim = 2, 40, 256
    x = jax.random.normal(k_x, (batch, seq, dim), jnp.float32)
    params = init_params(k_p, dim)

    out = jax.block_until_ready(resmlp_forward(x, params))
    ref = resmlp_reference(x, params)
    assert out.shape == x.shape
    assert jnp.allclose(out, ref, atol=3e-5, rtol=3e-5), "mismatch vs reference"

    # Exercise the bn-tiled (large-weight) path with a forced bn tile so the
    # reduction grid axis + f32 accumulator are covered by the test.
    dim2 = 512
    x2 = jax.random.normal(k_x2, (4, 24, dim2), jnp.float32)
    params2 = init_params(k_p2, dim2)
    out2 = jax.block_until_ready(resmlp_forward(x2, params2, force_bn_tile=128))
    ref2 = resmlp_reference(x2, params2)
    assert jnp.allclose(out2, ref2, atol=3e-5, rtol=3e-5), "mismatch (bn-tiled) vs reference"

    print("KERNEL_OK")
</pallas_src>

<mosaic_0001>
module attributes {stable_mosaic.version = 11 : i64} {
  func.func @resmlp_kernel(%arg0: i32, %arg1: memref<40x256xf32, #tpu.memory_space<vmem>>, %arg2: memref<256x128xf32, #tpu.memory_space<vmem>>, %arg3: memref<1x128xf32, #tpu.memory_space<vmem>>, %arg4: memref<128x256xf32, #tpu.memory_space<vmem>>, %arg5: memref<1x256xf32, #tpu.memory_space<vmem>>, %arg6: memref<1x256xf32, #tpu.memory_space<vmem>>, %arg7: memref<1x256xf32, #tpu.memory_space<vmem>>, %arg8: memref<40x256xf32, #tpu.memory_space<vmem>>) attributes {dimension_semantics = [#tpu.dimension_semantics<parallel>], iteration_bounds = array<i64: 2>, scalar_prefetch = 0 : i64, scratch_operands = 0 : i64, tpu.core_type = #tpu.core_type<tc>, window_params = [{transform_indices = @transform_0, window_bounds = array<i64: 40, 256>}, {pipeline_mode = #tpu.pipeline_mode<synchronous>, transform_indices = @transform_1, window_bounds = array<i64: 256, 128>}, {pipeline_mode = #tpu.pipeline_mode<synchronous>, transform_indices = @transform_2, window_bounds = array<i64: 1, 128>}, {pipeline_mode = #tpu.pipeline_mode<synchronous>, transform_indices = @transform_3, window_bounds = array<i64: 128, 256>}, {pipeline_mode = #tpu.pipeline_mode<synchronous>, transform_indices = @transform_4, window_bounds = array<i64: 1, 256>}, {pipeline_mode = #tpu.pipeline_mode<synchronous>, transform_indices = @transform_5, window_bounds = array<i64: 1, 256>}, {pipeline_mode = #tpu.pipeline_mode<synchronous>, transform_indices = @transform_6, window_bounds = array<i64: 1, 256>}, {transform_indices = @transform_7, window_bounds = array<i64: 40, 256>}]} {
    %c0 = arith.constant 0 : index
    %c0_0 = arith.constant 0 : index
    %0 = vector.load %arg1[%c0, %c0_0] : memref<40x256xf32, #tpu.memory_space<vmem>>, vector<40x256xf32>
    %c0_1 = arith.constant 0 : index
    %c0_2 = arith.constant 0 : index
    %1 = vector.load %arg2[%c0_1, %c0_2] : memref<256x128xf32, #tpu.memory_space<vmem>>, vector<256x128xf32>
    %cst = arith.constant dense<0.000000e+00> : vector<40x128xf32>
    %2 = tpu.matmul %0, %1, %cst {dimension_numbers = #tpu.dot_dimension_numbers<[1], [0], [0], [1], [0, 0, 1, 1], [], []>} : vector<40x256xf32>, vector<256x128xf32>, vector<40x128xf32> -> vector<40x128xf32>
    %c0_3 = arith.constant 0 : index
    %c0_4 = arith.constant 0 : index
    %3 = vector.load %arg3[%c0_3, %c0_4] : memref<1x128xf32, #tpu.memory_space<vmem>>, vector<1x128xf32>
    %4 = vector.broadcast %3 : vector<1x128xf32> to vector<40x128xf32>
    %5 = arith.addf %2, %4 : vector<40x128xf32>
    %cst_5 = arith.constant 0.000000e+00 : f32
    %6 = vector.broadcast %cst_5 : f32 to vector<40x128xf32>
    %7 = arith.maximumf %5, %6 : vector<40x128xf32>
    %c0_6 = arith.constant 0 : index
    %c0_7 = arith.constant 0 : index
    %8 = vector.load %arg4[%c0_6, %c0_7] : memref<128x256xf32, #tpu.memory_space<vmem>>, vector<128x256xf32>
    %cst_8 = arith.constant dense<0.000000e+00> : vector<40x256xf32>
    %9 = tpu.matmul %7, %8, %cst_8 {dimension_numbers = #tpu.dot_dimension_numbers<[1], [0], [0], [1], [0, 0, 1, 1], [], []>} : vector<40x128xf32>, vector<128x256xf32>, vector<40x256xf32> -> vector<40x256xf32>
    %c0_9 = arith.constant 0 : index
    %c0_10 = arith.constant 0 : index
    %10 = vector.load %arg5[%c0_9, %c0_10] : memref<1x256xf32, #tpu.memory_space<vmem>>, vector<1x256xf32>
    %11 = vector.broadcast %10 : vector<1x256xf32> to vector<40x256xf32>
    %12 = arith.addf %9, %11 : vector<40x256xf32>
    %c0_11 = arith.constant 0 : index
    %c0_12 = arith.constant 0 : index
    %13 = vector.load %arg6[%c0_11, %c0_12] : memref<1x256xf32, #tpu.memory_space<vmem>>, vector<1x256xf32>
    %c0_13 = arith.constant 0 : index
    %c0_14 = arith.constant 0 : index
    %14 = vector.load %arg7[%c0_13, %c0_14] : memref<1x256xf32, #tpu.memory_space<vmem>>, vector<1x256xf32>
    %cst_15 = arith.constant dense<0.000000e+00> : vector<40xf32>
    %15 = vector.multi_reduction <add>, %12, %cst_15 [1] : vector<40x256xf32> to vector<40xf32>
    %16 = vector.shape_cast %15 : vector<40xf32> to vector<40x1xf32>
    %cst_16 = arith.constant 3.906250e-03 : f32
    %17 = vector.broadcast %cst_16 : f32 to vector<40x1xf32>
    %18 = arith.mulf %16, %17 : vector<40x1xf32>
    %19 = vector.broadcast %18 : vector<40x1xf32> to vector<40x256xf32>
    %20 = arith.subf %12, %19 : vector<40x256xf32>
    %21 = arith.mulf %20, %20 : vector<40x256xf32>
    %cst_17 = arith.constant dense<0.000000e+00> : vector<40xf32>
    %22 = vector.multi_reduction <add>, %21, %cst_17 [1] : vector<40x256xf32> to vector<40xf32>
    %23 = vector.shape_cast %22 : vector<40xf32> to vector<40x1xf32>
    %cst_18 = arith.constant 3.906250e-03 : f32
    %24 = vector.broadcast %cst_18 : f32 to vector<40x1xf32>
    %25 = arith.mulf %23, %24 : vector<40x1xf32>
    %cst_19 = arith.constant 9.99999974E-6 : f32
    %26 = vector.broadcast %cst_19 : f32 to vector<40x1xf32>
    %27 = arith.addf %25, %26 : vector<40x1xf32>
    %28 = math.rsqrt %27 : vector<40x1xf32>
    %29 = vector.broadcast %28 : vector<40x1xf32> to vector<40x256xf32>
    %30 = arith.mulf %20, %29 : vector<40x256xf32>
    %31 = vector.broadcast %13 : vector<1x256xf32> to vector<40x256xf32>
    %32 = arith.mulf %30, %31 : vector<40x256xf32>
    %33 = vector.broadcast %14 : vector<1x256xf32> to vector<40x256xf32>
    %34 = arith.addf %32, %33 : vector<40x256xf32>
    %35 = arith.addf %0, %34 : vector<40x256xf32>
    %c0_20 = arith.constant 0 : index
    %c0_21 = arith.constant 0 : index
    %36 = vector.load %arg8[%c0_20, %c0_21] : memref<40x256xf32, #tpu.memory_space<vmem>>, vector<40x256xf32>
    tpu.vector_store %arg8[%c0_20, %c0_21], %35 {strides = array<i32>} : memref<40x256xf32, #tpu.memory_space<vmem>>, vector<40x256xf32>,
    return
  }
  func.func @transform_0(%arg0: i32) -> (i32, i32) {
    %c0_i32 = arith.constant 0 : i32
    %c0_i32_0 = arith.constant 0 : i32
    return %arg0, %c0_i32 : i32, i32
  }
  func.func @transform_1(%arg0: i32) -> (i32, i32) {
    %c0_i32 = arith.constant 0 : i32
    %c0_i32_0 = arith.constant 0 : i32
    %c0_i32_1 = arith.constant 0 : i32
    return %c0_i32, %c0_i32_0 : i32, i32
  }
  func.func @transform_2(%arg0: i32) -> (i32, i32) {
    %c0_i32 = arith.constant 0 : i32
    %c0_i32_0 = arith.constant 0 : i32
    %c0_i32_1 = arith.constant 0 : i32
    return %c0_i32, %c0_i32_0 : i32, i32
  }
  func.func @transform_3(%arg0: i32) -> (i32, i32) {
    %c0_i32 = arith.constant 0 : i32
    %c0_i32_0 = arith.constant 0 : i32
    %c0_i32_1 = arith.constant 0 : i32
    return %c0_i32, %c0_i32_0 : i32, i32
  }
  func.func @transform_4(%arg0: i32) -> (i32, i32) {
    %c0_i32 = arith.constant 0 : i32
    %c0_i32_0 = arith.constant 0 : i32
    %c0_i32_1 = arith.constant 0 : i32
    return %c0_i32, %c0_i32_0 : i32, i32
  }
  func.func @transform_5(%arg0: i32) -> (i32, i32) {
    %c0_i32 = arith.constant 0 : i32
    %c0_i32_0 = arith.constant 0 : i32
    %c0_i32_1 = arith.constant 0 : i32
    return %c0_i32, %c0_i32_0 : i32, i32
  }
  func.func @transform_6(%arg0: i32) -> (i32, i32) {
    %c0_i32 = arith.constant 0 : i32
    %c0_i32_0 = arith.constant 0 : i32
    %c0_i32_1 = arith.constant 0 : i32
    return %c0_i32, %c0_i32_0 : i32, i32
  }
  func.func @transform_7(%arg0: i32) -> (i32, i32) {
    %c0_i32 = arith.constant 0 : i32
    %c0_i32_0 = arith.constant 0 : i32
    return %arg0, %c0_i32 : i32, i32
  }
}

</mosaic_0001>

<bundles_post_ra>
// kernel: tpu_custom_call.1
= control target key start
LH: loop header
LB: loop body
LE: loop exit
PB: predicated region body
PF: predicated region fallthrough
CT: control target
= control target key end

     0   :  { %s1614_s0 = inlined_call_operand.hbm [shape: f32[80,256], index: 0, kind: input, shape index: {}]   ;;  %s1615_s1 = inlined_call_operand.hbm [shape: f32[256,128], index: 1, kind: input, shape index: {}]   ;;  %s1616_s2 = inlined_call_operand.hbm [shape: f32[1,128], index: 2, kind: input, shape index: {}]   ;;  %s1617_s3 = inlined_call_operand.hbm [shape: f32[128,256], index: 3, kind: input, shape index: {}]   ;;  %s1618_s4 = inlined_call_operand.vmem [shape: f32[1,256], index: 4, kind: input, shape index: {}]   ;;  %s1619_s5 = inlined_call_operand.vmem [shape: f32[1,256], index: 5, kind: input, shape index: {}]   ;;  %s1620_s6 = inlined_call_operand.hbm [shape: f32[1,256], index: 6, kind: input, shape index: {}]   ;;  %s1621_s7 = inlined_call_operand.hbm [shape: f32[80,256], index: 7, kind: output, shape index: {}]  }
   0x1   :  { %1624 = sst [smem:[#allocation16_spill]] %s1615_s1 }
   0x2   :  { %1625 = sst [smem:[#allocation17_spill]] %s1616_s2 }
   0x3   :  { %1626 = sst [smem:[#allocation18_spill]] %s1617_s3 }
   0x4   :  { %12 = vsyncpa [#allocation3], 0 }
   0x5   :  { %14 = vsyncpa [#allocation3 + $0x1], 0 }
   0x6   :  { %15 = vsyncpa [#allocation6], 0 }
   0x7   :  { %16 = vsyncpa [#allocation9], 0 }
   0x8   :  { %17 = vsyncpa [#allocation4], 0 }
   0x9   :  { %19 = vsyncpa [#allocation4 + $0x1], 0  ;;  %s1292_s24 = smov 0   ;;  %s1294_s25 = smov 0  }
   0xa   :  { %s1296_s26 = smov 0   ;;  %s1298_s27 = smov 0  }
   0xb LB: > { %s1313_s28 = sadd.s32 4294967295, %s1240_s27   ;;  %s886_s29 = sadd.s32 4294967294, %s1240_s27   ;;  %s1240_s27 = sphi %s1298_s27, %s1642_s27   ;;  %s1236_s26 = sphi %s1296_s26, %s1641_s26   ;;  %s1232_s25 = sphi %s1294_s25, %s1640_s25   ;;  %s1228_s24 = sphi %s1292_s24, %s1639_s24  }
   0xc   : > { %p45_p0 = scmp.ne.s32.totalorder %s1232_s25, %s1228_s24  ;;  %p46_p1 = scmp.eq.s32.totalorder %s1313_s28, 0 }
   0xd   : > { %p195_p2 = scmp.eq.s32.totalorder %s1313_s28, 1  ;;  %p201_p3 = scmp.eq.s32.totalorder %s886_s29, 1 }
   0xe   : > { %p1322_p4 = por %p46_p1, %p45_p0  ;;  %p887_p5 = scmp.ge.s32.totalorder %s1240_s27, 1 }
   0xf   : > { %p1327_p6 = por %p201_p3, %p45_p0  ;;  %p208_p7 = scmp.lt.s32.totalorder %s1240_s27, 3 }
  0x10   : > { %s1629_s1 = sld [smem:[#allocation16_spill]]  ;;  %s1242_s13 = smov [#allocation5]  }
  0x11   : > { %p1335_p8 = pnand %p887_p5, %p208_p7  ;;  %s221_s14 = sshll.u32 %s1242_s13, 4  ;;  %s222_s14 = int_to_ptr.vmem [resolvable:$true] %s221_s14 }
  0x12   : > { %s1632_s3 = sld [smem:[#allocation18_spill]]  ;;  %s1243_s19 = smov 128  }
  0x13   : > { %p932_p9 = pneg %p1335_p8  ;;  %s1244_s20 = smov 8  }
  0x14   : > { %s1245_s21 = smov [#allocation8]   ;;  %s1622_s23 = smov 256  }
  0x15   : > { %p1343_p10 = pnand %p932_p9, %p46_p1  ;;  %s247_s22 = sshll.u32 %s1245_s21, 4  ;;  %s248_s22 = int_to_ptr.vmem [resolvable:$true] %s247_s22 }
  0x16   : > { %s219_s11 = sshll.u32 %s1629_s1, 4  ;;  %s1623_s29 = smov 16   ;;  %s220_s11 = int_to_ptr.hbm [resolvable:$true] %s219_s11 }
  0x17   : > { %935 = dma.hbm_to_vmem [thread:$0]  (!%p1343_p10), %s220_s11, 4096, %s222_s14, [#allocation6], %s1243_s19, %s1243_s19, %s1244_s20  }
  0x18   : > { %s245_s18 = sshll.u32 %s1632_s3, 4  ;;  %s1633_s2 = sld [smem:[#allocation17_spill]]  ;;  %s246_s18 = int_to_ptr.hbm [resolvable:$true] %s245_s18 }
  0x19   : > { %941 = dma.hbm_to_vmem [thread:$0]  (!%p1343_p10), %s246_s18, 4096, %s248_s22, [#allocation9], %s1622_s23, %s1622_s23, %s1623_s29  }
  0x1a   : > { %s1248_s13 = smov [#allocation7]   ;;  %s266_s19 = sshll.u32 %s1620_s6, 4  ;;  %s267_s19 = int_to_ptr.hbm [resolvable:$true] %s266_s19 }
  0x1b   : > { %s236_s14 = sshll.u32 %s1248_s13, 4  ;;  %s1249_s18 = smov [#allocation10]   ;;  %s237_s14 = int_to_ptr.vmem [resolvable:$true] %s236_s14 }
  0x1c   : > { %s268_s20 = sshll.u32 %s1249_s18, 4  ;;  %s1369_s21 = sadd.s32 1, %s1240_s27   ;;  %s269_s20 = int_to_ptr.vmem [resolvable:$true] %s268_s20 }
  0x1d   : > { %944 = dma.hbm_to_vmem [thread:$0]  (!%p1343_p10), %s267_s19, 32, %s269_s20, [#allocation9]  }
  0x1e   : > { %s234_s11 = sshll.u32 %s1633_s2, 4  ;;  %s32_s22 = sadd.s32 1, %s1236_s26  ;;  %s235_s11 = int_to_ptr.hbm [resolvable:$true] %s234_s11 }
  0x1f   : > { %938 = dma.hbm_to_vmem [thread:$0]  (!%p1343_p10), %s235_s11, 16, %s237_s14, [#allocation6]  }
  0x20   : > { %s29_s9 = ssub.s32 %s1240_s27, %s1369_s21  ;;  %p39_p12 = scmp.ne.s32.totalorder %s1236_s26, %s1232_s25 }
  0x21   : > { %p30_p13 = scmp.eq.s32.totalorder %s29_s9, 0  ;;  %p40_p0 = scmp.eq.s32.totalorder %s1240_s27, 0 }
  0x22   : > { %p1379_p3 = por %p195_p2, %p39_p12  ;;  %p957_p5 = scmp.lt.s32.totalorder %s1240_s27, 2 }
  0x23   : > { %s1385_s11 = scalar_select %p30_p13, %s1236_s26, %s32_s22  }
  0x24   : > { %p41_p7 = por %p40_p0, %p39_p12  ;;  %s279_s13 = sand.u32 1, %s1236_s26  }
  0x25   : > { %s910_s15 = smul.u32 80, %s279_s13  ;;  %s280_s22 = scalar_lea.sflag [#allocation3], %s279_s13 }
  0x26   : > { %s908_s14 = smul.u32 80, %s1240_s27  ;;  %p1389_p9 = pnand %p957_p5, %p41_p7 }
  0x27   : > { %s283_s20 = scalar_lea.vmem [#allocation2], %s910_s15  ;;  %s1143_s17 = scalar_lea.hbm %s1614_s0, 160 }
  0x28   : > { %s289_s18 = scalar_lea.hbm %s1614_s0, %s908_s14  ;;  %s292_s9 = sshll.u32 %s283_s20, 4  ;;  %s293_s9 = int_to_ptr.vmem [resolvable:$true] %s292_s9 }
  0x29   : > { %s290_s23 = sshll.u32 %s289_s18, 4  ;;  %p1140_p10 = pneg %p1389_p9  ;;  %s291_s23 = int_to_ptr.hbm [resolvable:$true] %s290_s23 }
  0x2a   : > { %s1136_s29 = sshra.s32 %s291_s23, 4  ;;  %s1137_s29 = int_to_ptr.hbm [resolvable:$true] %s1136_s29 }
  0x2b   : > { %s1138_s1 = scalar_lea.hbm %s1137_s29, 80  ;;  %p1144_p0 = scmp.lt.s32.totalorder %s1137_s29, %s1614_s0 }
  0x2c   : > { %p1139_p2 = scmp.ne.s32.totalorder %s1137_s29, %s1138_s1  ;;  %p1145_p5 = scmp.lt.s32.totalorder %s1143_s17, %s1138_s1 }
  0x2e   : > { %p1141_p12 = pnand %p1140_p10, %p1139_p2  ;;  %p1146_p7 = por %p1145_p5, %p1144_p0 }
  0x30   : > { %p1142_p13 = pneg %p1141_p12 }
  0x32   : > { %p1147_p11 = pnand %p1146_p7, %p1142_p13 }
  0x34   : > { %1150 = shalt.err (!%p1147_p11)
}
  0x35   : > { %s1636_s13 = smov 16   ;;  %s1637_s15 = smov 256  }
  0x36   : > { %948 = dma.hbm_to_vmem [thread:$0]  (!%p1389_p9), %s291_s23, 1280, %s293_s9, %s280_s22, %s1637_s15, %s1637_s15, %s1636_s13  }
  0x37   : > { %304 = sbr.rel (%p1335_p8) target bundleno = 672 (0x2a0), region = 48  ;;  %s1412_s2 = sand.u32 (!%p1335_p8), 1, %s1232_s25  }
  0x38   : > { %s911_s1 = smul.u32 (!%p1335_p8), 80, %s1412_s2  ;;  %s307_s3 = scalar_lea.sflag (!%p1335_p8), [#allocation3], %s1412_s2 }
  0x3a   : > { %s1418_s29 = scalar_lea.vmem (!%p1335_p8), [#allocation2], %s911_s1 }
  0x3c   : > { %1211 = dma.done.wait (%p1322_p4), %s307_s3, 1280  }
  0x3d   : > { %1213 = vsyncadd (%p1322_p4), %s307_s3, 4294966016 }
  0x3e   : > { %1215 = dma.done.wait (%p46_p1), [#allocation6], 4112  }
  0x3f   : > { %1217 = vsyncadd (%p46_p1), [#allocation6], 4294963184 }
  0x40   : > { %1219 = dma.done.wait (%p46_p1), [#allocation9], 4128  }
  0x41   : > { %1221 = vsyncadd (%p46_p1), [#allocation9], 4294963168  ;;  %v389_v0 = vld [vmem:[#allocation5 + $0x78] sm:$0xff]  ;;  %v388_v1 = vld [vmem:[#allocation5 + $0x70] sm:$0xff]  ;;  %s1536_s18 = scalar_lea.vmem [#allocation11], %s911_s1  ;;  %s909_s20 = smul.u32 80, %s1313_s28 }
  0x42   : > { %v405_v2 = vld [vmem:[#allocation5 + $0xf8] sm:$0xff]  ;;  %410 = vmatpush.msra.mxu0 %v389_v0  ;;  %v404_v3 = vld [vmem:[#allocation5 + $0xf0] sm:$0xff]  ;;  %v387_v4 = vld [vmem:[#allocation5 + $0x68] sm:$0xff]  ;;  %s772_s17 = sshll.u32 %s1536_s18, 4  ;;  %s759_s14 = scalar_lea.sflag [#allocation4], %s1412_s2  ;;  %s773_s17 = int_to_ptr.vmem [resolvable:$true] %s772_s17 }
  0x43   : > { %442 = vmatpush.msra.mxu1 %v405_v2  ;;  %v403_v5 = vld [vmem:[#allocation5 + $0xe8] sm:$0xff]  ;;  %v386_v6 = vld [vmem:[#allocation5 + $0x60] sm:$0xff]  ;;  %v385_v8 = vld [vmem:[#allocation5 + $0x58] sm:$0xff]  ;;  %s771_s28 = scalar_lea.hbm %s1621_s7, %s909_s20 }
  0x44   : > { %411 = vmatpush.msra.mxu0 %v388_v1  ;;  %v402_v7 = vld [vmem:[#allocation5 + $0xe0] sm:$0xff]  ;;  %v401_v9 = vld [vmem:[#allocation5 + $0xd8] sm:$0xff]  ;;  %v384_v10 = vld [vmem:[#allocation5 + $0x50] sm:$0xff]  ;;  %s774_s19 = sshll.u32 %s771_s28, 4  ;;  %s775_s19 = int_to_ptr.hbm [resolvable:$true] %s774_s19 }
  0x45   : > { %443 = vmatpush.msra.mxu1 %v404_v3  ;;  %v400_v11 = vld [vmem:[#allocation5 + $0xd0] sm:$0xff]  ;;  %v383_v12 = vld [vmem:[#allocation5 + $0x48] sm:$0xff]  ;;  %v382_v14 = vld [vmem:[#allocation5 + $0x40] sm:$0xff]  ;;  %s1180_s13 = sshra.s32 %s775_s19, 4  ;;  %s1181_s13 = int_to_ptr.hbm [resolvable:$true] %s1180_s13 }
  0x46   : > { %412 = vmatpush.msra.mxu0 %v387_v4  ;;  %v399_v13 = vld [vmem:[#allocation5 + $0xc8] sm:$0xff]  ;;  %v398_v15 = vld [vmem:[#allocation5 + $0xc0] sm:$0xff]  ;;  %v381_v16 = vld [vmem:[#allocation5 + $0x38] sm:$0xff]  ;;  %s1182_s15 = scalar_lea.hbm %s1181_s13, 80  ;;  %p1187_p11 = scmp.lt.s32.totalorder %s1181_s13, %s1621_s7 }
  0x47   : > { %444 = vmatpush.msra.mxu1 %v403_v5  ;;  %v397_v17 = vld [vmem:[#allocation5 + $0xb8] sm:$0xff]  ;;  %v380_v18 = vld [vmem:[#allocation5 + $0x30] sm:$0xff]  ;;  %v379_v20 = vld [vmem:[#allocation5 + $0x28] sm:$0xff]  ;;  %p1183_p1 = scmp.ne.s32.totalorder %s1181_s13, %s1182_s15 }
  0x48   : > { %413 = vmatpush.msra.mxu0 %v386_v6  ;;  %v396_v19 = vld [vmem:[#allocation5 + $0xb0] sm:$0xff]  ;;  %v395_v21 = vld [vmem:[#allocation5 + $0xa8] sm:$0xff]  ;;  %v378_v22 = vld [vmem:[#allocation5 + $0x20] sm:$0xff] }
  0x49   : > { %445 = vmatpush.msra.mxu1 %v402_v7  ;;  %v394_v23 = vld [vmem:[#allocation5 + $0xa0] sm:$0xff]  ;;  %v377_v24 = vld [vmem:[#allocation5 + $0x18] sm:$0xff]  ;;  %v376_v26 = vld [vmem:[#allocation5 + $0x10] sm:$0xff]  ;;  %p1184_p4 = pnand %p1183_p1, %p1379_p3 }
  0x4a   : > { %414 = vmatpush.msra.mxu0 %v385_v8  ;;  %v393_v25 = vld [vmem:[#allocation5 + $0x98] sm:$0xff]  ;;  %v392_v27 = vld [vmem:[#allocation5 + $0x90] sm:$0xff]  ;;  %v375_v28 = vld [vmem:[#allocation5 + $0x8] sm:$0xff] }
  0x4b   : > { %446 = vmatpush.msra.mxu1 %v401_v9  ;;  %v391_v29 = vld [vmem:[#allocation5 + $0x88] sm:$0xff]  ;;  %v374_v30 = vld [vmem:[#allocation5] sm:$0xff]  ;;  %v509_v34 = vld [vmem:[#allocation8 + $0xf0] sm:$0xff]  ;;  %p1185_p8 = pneg %p1184_p4 }
  0x4c   : > { %415 = vmatpush.msra.mxu0 %v384_v10  ;;  %v390_v31 = vld [vmem:[#allocation5 + $0x80] sm:$0xff]  ;;  %v1436_v33 = vld [vmem:[%s1418_s29 + $0x8] sm:$0xff]  ;;  %517 = vmatpush.msra.mxu2 %v509_v34  ;;  %v1444_v43 = vld [vmem:[%s1418_s29 + $0x18] sm:$0xff] }
  0x4d   : > { %447 = vmatpush.msra.mxu1 %v400_v11  ;;  %v1433_v32 = vld [vmem:[%s1418_s29] sm:$0xff]  ;;  %v1441_v42 = vld [vmem:[%s1418_s29 + $0x10] sm:$0xff]  ;;  %v1452_v53 = vld [vmem:[%s1418_s29 + $0x28] sm:$0xff] }
  0x4e   : > { %416 = vmatpush.msra.mxu0 %v383_v12  ;;  %v510_v35 = vld [vmem:[#allocation8 + $0xf8] sm:$0xff]  ;;  %v507_v36 = vld [vmem:[#allocation8 + $0xe0] sm:$0xff]  ;;  %v508_v37 = vld [vmem:[#allocation8 + $0xe8] sm:$0xff] }
  0x4f   : > { %448 = vmatpush.msra.mxu1 %v399_v13  ;;  %549 = vmatpush.msra.mxu3 %v510_v35  ;;  %v505_v38 = vld [vmem:[#allocation8 + $0xd0] sm:$0xff]  ;;  %v506_v39 = vld [vmem:[#allocation8 + $0xd8] sm:$0xff]  ;;  %v503_v40 = vld [vmem:[#allocation8 + $0xc0] sm:$0xff] }
  0x50   : > { %417 = vmatpush.msra.mxu0 %v382_v14  ;;  %518 = vmatpush.msra.mxu2 %v507_v36  ;;  %v504_v41 = vld [vmem:[#allocation8 + $0xc8] sm:$0xff]  ;;  %v501_v44 = vld [vmem:[#allocation8 + $0xb0] sm:$0xff]  ;;  %v502_v45 = vld [vmem:[#allocation8 + $0xb8] sm:$0xff] }
  0x51   : > { %449 = vmatpush.msra.mxu1 %v398_v15  ;;  %550 = vmatpush.msra.mxu3 %v508_v37  ;;  %v499_v46 = vld [vmem:[#allocation8 + $0xa0] sm:$0xff]  ;;  %v500_v47 = vld [vmem:[#allocation8 + $0xa8] sm:$0xff]  ;;  %v497_v48 = vld [vmem:[#allocation8 + $0x90] sm:$0xff] }
  0x52   : > { %418 = vmatpush.msra.mxu0 %v381_v16  ;;  %519 = vmatpush.msra.mxu2 %v505_v38  ;;  %v498_v49 = vld [vmem:[#allocation8 + $0x98] sm:$0xff]  ;;  %v495_v50 = vld [vmem:[#allocation8 + $0x80] sm:$0xff]  ;;  %v496_v51 = vld [vmem:[#allocation8 + $0x88] sm:$0xff] }
  0x53   : > { %450 = vmatpush.msra.mxu1 %v397_v17  ;;  %551 = vmatpush.msra.mxu3 %v506_v39  ;;  %v1449_v52 = vld [vmem:[%s1418_s29 + $0x20] sm:$0xff]  ;;  %v1457_v62 = vld [vmem:[%s1418_s29 + $0x30] sm:$0xff]  ;;  %v1460_v63 = vld [vmem:[%s1418_s29 + $0x38] sm:$0xff] }
  0x54   : > { %419 = vmatpush.msra.mxu0 %v380_v18  ;;  %520 = vmatpush.msra.mxu2 %v503_v40  ;;  %v493_v54 = vld [vmem:[#allocation8 + $0x70] sm:$0xff]  ;;  %v494_v55 = vld [vmem:[#allocation8 + $0x78] sm:$0xff]  ;;  %v491_v56 = vld [vmem:[#allocation8 + $0x60] sm:$0xff] }
  0x55   : > { %451 = vmatpush.msra.mxu1 %v396_v19  ;;  %552 = vmatpush.msra.mxu3 %v504_v41  ;;  %v492_v57 = vld [vmem:[#allocation8 + $0x68] sm:$0xff]  ;;  %v489_v58 = vld [vmem:[#allocation8 + $0x50] sm:$0xff]  ;;  %v490_v59 = vld [vmem:[#allocation8 + $0x58] sm:$0xff] }
  0x56   : > { %420 = vmatpush.msra.mxu0 %v379_v20  ;;  %521 = vmatpush.msra.mxu2 %v501_v44  ;;  %v487_v60 = vld [vmem:[#allocation8 + $0x40] sm:$0xff]  ;;  %v488_v61 = vld [vmem:[#allocation8 + $0x48] sm:$0xff]  ;;  %v485_v2 = vld [vmem:[#allocation8 + $0x30] sm:$0xff] }
  0x57   : > { %452 = vmatpush.msra.mxu1 %v395_v21  ;;  %553 = vmatpush.msra.mxu3 %v502_v45  ;;  %v1465_v0 = vld [vmem:[%s1418_s29 + $0x40] sm:$0xff]  ;;  %v1468_v1 = vld [vmem:[%s1418_s29 + $0x48] sm:$0xff]  ;;  %s1186_s29 = scalar_lea.hbm %s1621_s7, 160 }
  0x58   : > { %421 = vmatpush.msra.mxu0 %v378_v22  ;;  %522 = vmatpush.msra.mxu2 %v499_v46  ;;  %v486_v3 = vld [vmem:[#allocation8 + $0x38] sm:$0xff]  ;;  %v483_v4 = vld [vmem:[#allocation8 + $0x20] sm:$0xff]  ;;  %v484_v5 = vld [vmem:[#allocation8 + $0x28] sm:$0xff]  ;;  %p1188_p9 = scmp.lt.s32.totalorder %s1186_s29, %s1182_s15 }
  0x59   : > { %453 = vmatpush.msra.mxu1 %v394_v23  ;;  %554 = vmatpush.msra.mxu3 %v500_v47  ;;  %v481_v6 = vld [vmem:[#allocation8 + $0x10] sm:$0xff]  ;;  %v482_v7 = vld [vmem:[#allocation8 + $0x18] sm:$0xff]  ;;  %v479_v8 = vld [vmem:[#allocation8] sm:$0xff] }
  0x5a   : > { %422 = vmatpush.msra.mxu0 %v377_v24  ;;  %523 = vmatpush.msra.mxu2 %v497_v48  ;;  %v480_v9 = vld [vmem:[#allocation8 + $0x8] sm:$0xff]  ;;  %v1005_v10 = vld [vmem:[#allocation7] ss:$0 sm:$0xff]  ;;  %p1189_p2 = por %p1188_p9, %p1187_p11 }
  0x5b   : > { %454 = vmatpush.msra.mxu1 %v393_v25  ;;  %555 = vmatpush.msra.mxu3 %v498_v49  ;;  %v511_v38 = vld [vmem:[%s1618_s4] sm:$0x3] }
  0x5c   : > { %423 = vmatpush.msra.mxu0 %v376_v26  ;;  %524 = vmatpush.msra.mxu2 %v495_v50  ;;  %v513_v39 = vperm.slane %v511_v38, 0  ;;  %v514_v40 = vperm.slane %v511_v38, 1  ;;  %p1190_p10 = pnand %p1189_p2, %p1185_p8 }
  0x5d   : > { %455 = vmatpush.msra.mxu1 %v392_v27  ;;  %556 = vmatpush.msra.mxu3 %v496_v51 }
  0x5e   : > { %424 = vmatpush.msra.mxu0 %v375_v28  ;;  %525 = vmatpush.msra.mxu2 %v493_v54 }
  0x5f   : > { %456 = vmatpush.msra.mxu1 %v391_v29  ;;  %557 = vmatpush.msra.mxu3 %v494_v55 }
  0x60   : > { %425 = vmatpush.msra.mxu0 %v374_v30  ;;  %526 = vmatpush.msra.mxu2 %v491_v56 }
  0x61   : > { %457 = vmatpush.msra.mxu1 %v390_v31  ;;  %426 = vmatmul.f32.vlgmr.msra.gmra.mxu0 %v1433_v32 }
  0x62   : > { %458 = vmatmul.f32.vlgmr.msra.gmra.mxu1 %v1436_v33  ;;  %558 = vmatpush.msra.mxu3 %v492_v57 }
  0x63   : > { %527 = vmatpush.msra.mxu2 %v489_v58 }
  0x64   : > { %559 = vmatpush.msra.mxu3 %v490_v59 }
  0x65   : > { %528 = vmatpush.msra.mxu2 %v487_v60 }
  0x66   : > { %560 = vmatpush.msra.mxu3 %v488_v61 }
  0x67   : > { %529 = vmatpush.msra.mxu2 %v485_v2 }
  0x68   : > { %561 = vmatpush.msra.mxu3 %v486_v3 }
  0x69   : > { %429 = vmatmul.f32.gmra.mxu0 %v1441_v42  ;;  %530 = vmatpush.msra.mxu2 %v483_v4 }
  0x6a   : > { %461 = vmatmul.f32.gmra.mxu1 %v1444_v43  ;;  %562 = vmatpush.msra.mxu3 %v484_v5 }
  0x6b   : > { %531 = vmatpush.msra.mxu2 %v481_v6 }
  0x6c   : > { %563 = vmatpush.msra.mxu3 %v482_v7 }
  0x6d   : > { %532 = vmatpush.msra.mxu2 %v479_v8 }
  0x6e   : > { %564 = vmatpush.msra.mxu3 %v480_v9 }
  0x71   : > { %432 = vmatmul.f32.gmra.mxu0 %v1449_v52 }
  0x72   : > { %464 = vmatmul.f32.gmra.mxu1 %v1452_v53 }
  0x79   : > { %435 = vmatmul.f32.gmra.mxu0 %v1457_v62 }
  0x7a   : > { %467 = vmatmul.f32.gmra.mxu1 %v1460_v63 }
  0x81   : > { %438 = vmatmul.f32.gmra.mxu0 %v1465_v0 }
  0x82   : > { %470 = vmatmul.f32.gmra.mxu1 %v1468_v1 }
  0xde   : > { %v427_v11 = vpop.f32.mrf.mxu0 }
  0xdf   : > { %v459_v12 = vpop.f32.mrf.mxu1  ;;  %v428_v13 = vadd.f32 %v1005_v10, %v427_v11 }
  0xe1   : > { %v460_v14 = vadd.f32 %v459_v12, %v428_v13 }
  0xe3   : > { %v474_v15 = vmax.f32 %v460_v14, 0.0 }
  0xe5   : > { %533 = vmatmul.f32.vlgmr.msra.gmra.mxu2 %v474_v15  ;;  %565 = vmatmul.f32.vlgmr.msra.gmra.mxu3 %v474_v15 }
  0xe6   : > { %v430_v16 = vpop.f32.mrf.mxu0 }
  0xe7   : > { %v462_v17 = vpop.f32.mrf.mxu1  ;;  %v431_v18 = vadd.f32 %v1005_v10, %v430_v16 }
  0xe9   : > { %v463_v19 = vadd.f32 %v462_v17, %v431_v18 }
  0xeb   : > { %v475_v20 = vmax.f32 %v463_v19, 0.0 }
  0xed   : > { %536 = vmatmul.f32.gmra.mxu2 %v475_v20  ;;  %568 = vmatmul.f32.gmra.mxu3 %v475_v20 }
  0xee   : > { %v433_v21 = vpop.f32.mrf.mxu0 }
  0xef   : > { %v465_v22 = vpop.f32.mrf.mxu1  ;;  %v434_v23 = vadd.f32 %v1005_v10, %v433_v21 }
  0xf1   : > { %v466_v24 = vadd.f32 %v465_v22, %v434_v23 }
  0xf3   : > { %v476_v25 = vmax.f32 %v466_v24, 0.0 }
  0xf5   : > { %539 = vmatmul.f32.gmra.mxu2 %v476_v25  ;;  %571 = vmatmul.f32.gmra.mxu3 %v476_v25 }
  0xf6   : > { %v436_v26 = vpop.f32.mrf.mxu0 }
  0xf7   : > { %v468_v27 = vpop.f32.mrf.mxu1  ;;  %v437_v28 = vadd.f32 %v1005_v10, %v436_v26 }
  0xf9   : > { %v469_v29 = vadd.f32 %v468_v27, %v437_v28 }
  0xfb   : > { %v477_v30 = vmax.f32 %v469_v29, 0.0 }
  0xfd   : > { %542 = vmatmul.f32.gmra.mxu2 %v477_v30  ;;  %574 = vmatmul.f32.gmra.mxu3 %v477_v30 }
  0xfe   : > { %v439_v31 = vpop.f32.mrf.mxu0 }
  0xff   : > { %v471_v34 = vpop.f32.mrf.mxu1  ;;  %v440_v35 = vadd.f32 %v1005_v10, %v439_v31 }
 0x101   : > { %v472_v36 = vadd.f32 %v471_v34, %v440_v35 }
 0x103   : > { %v478_v37 = vmax.f32 %v472_v36, 0.0 }
 0x105   : > { %545 = vmatmul.f32.gmra.mxu2 %v478_v37  ;;  %577 = vmatmul.f32.gmra.mxu3 %v478_v37 }
 0x168   : > { %v534_v41 = vpop.f32.mrf.mxu2  ;;  %v566_v44 = vpop.f32.mrf.mxu3 }
 0x169   : > { %v535_v45 = vadd.f32 %v534_v41, %v513_v39  ;;  %v567_v46 = vadd.f32 %v566_v44, %v514_v40 }
 0x16b   : > { %v583_v47 = vadd.f32 %v567_v46, %v535_v45 }
 0x16d   : > { %584 = vadd.xlane.f32.xlu0 %v583_v47 }
 0x170   : > { %v537_v48 = vpop.f32.mrf.mxu2  ;;  %v569_v49 = vpop.f32.mrf.mxu3 }
 0x171   : > { %v538_v50 = vadd.f32 %v537_v48, %v513_v39  ;;  %v570_v51 = vadd.f32 %v569_v49, %v514_v40 }
 0x173   : > { %v586_v54 = vadd.f32 %v570_v51, %v538_v50 }
 0x175   : > { %587 = vadd.xlane.f32.xlu0 %v586_v54 }
 0x178   : > { %v540_v55 = vpop.f32.mrf.mxu2  ;;  %v572_v56 = vpop.f32.mrf.mxu3 }
 0x179   : > { %v541_v57 = vadd.f32 %v540_v55, %v513_v39  ;;  %v573_v58 = vadd.f32 %v572_v56, %v514_v40 }
 0x17b   : > { %v589_v59 = vadd.f32 %v573_v58, %v541_v57 }
 0x17d   : > { %590 = vadd.xlane.f32.xlu1 %v589_v59 }
 0x180   : > { %v543_v60 = vpop.f32.mrf.mxu2  ;;  %v575_v61 = vpop.f32.mrf.mxu3 }
 0x181   : > { %v544_v2 = vadd.f32 %v543_v60, %v513_v39  ;;  %v576_v3 = vadd.f32 %v575_v61, %v514_v40 }
 0x183   : > { %v592_v4 = vadd.f32 %v576_v3, %v544_v2 }
 0x185   : > { %593 = vadd.xlane.f32.xlu1 %v592_v4 }
 0x188   : > { %v546_v5 = vpop.f32.mrf.mxu2  ;;  %v578_v6 = vpop.f32.mrf.mxu3 }
 0x189   : > { %v547_v7 = vadd.f32 %v546_v5, %v513_v39  ;;  %v579_v8 = vadd.f32 %v578_v6, %v514_v40 }
 0x18b   : > { %v595_v9 = vadd.f32 %v579_v8, %v547_v7 }
 0x18d   : > { %596 = vadd.xlane.f32.xlu2 %v595_v9 }
 0x1e0   : > { %v585_v10 = vpop.xlane.xlu0 %584 }
 0x1e1   : > { %v598_v11 = vmul.f32 0.00390625, %v585_v10 }
 0x1e3   : > { %v1475_v12 = vsub.f32 %v535_v45, %v598_v11  ;;  %v1477_v13 = vsub.f32 %v567_v46, %v598_v11 }
 0x1e5   : > { %v613_v14 = vmul.f32 %v1475_v12, %v1475_v12  ;;  %v614_v15 = vmul.f32 %v1477_v13, %v1477_v13 }
 0x1e7   : > { %v623_v16 = vadd.f32 %v614_v15, %v613_v14 }
 0x1e8   : > { %v588_v17 = vpop.xlane.xlu0 %587 }
 0x1e9   : > { %v599_v18 = vmul.f32 0.00390625, %v588_v17  ;;  %624 = vadd.xlane.f32.xlu2 %v623_v16 }
 0x1eb   : > { %v1483_v19 = vsub.f32 %v538_v50, %v599_v18  ;;  %v1485_v20 = vsub.f32 %v570_v51, %v599_v18 }
 0x1ed   : > { %v615_v21 = vmul.f32 %v1483_v19, %v1483_v19  ;;  %v616_v22 = vmul.f32 %v1485_v20, %v1485_v20 }
 0x1ef   : > { %v626_v23 = vadd.f32 %v616_v22, %v615_v21 }
 0x1f0   : > { %v591_v24 = vpop.xlane.xlu1 %590 }
 0x1f1   : > { %v600_v25 = vmul.f32 0.00390625, %v591_v24  ;;  %627 = vadd.xlane.f32.xlu0 %v626_v23 }
 0x1f3   : > { %v1491_v26 = vsub.f32 %v541_v57, %v600_v25  ;;  %v1493_v27 = vsub.f32 %v573_v58, %v600_v25 }
 0x1f5   : > { %v617_v28 = vmul.f32 %v1491_v26, %v1491_v26  ;;  %v618_v29 = vmul.f32 %v1493_v27, %v1493_v27 }
 0x1f7   : > { %v629_v30 = vadd.f32 %v618_v29, %v617_v28 }
 0x1f8   : > { %v594_v31 = vpop.xlane.xlu1 %593 }
 0x1f9   : > { %v601_v34 = vmul.f32 0.00390625, %v594_v31  ;;  %630 = vadd.xlane.f32.xlu1 %v629_v30 }
 0x1fb   : > { %v1499_v35 = vsub.f32 %v544_v2, %v601_v34  ;;  %v1501_v36 = vsub.f32 %v576_v3, %v601_v34  ;;  %v581_v3 = vld [vmem:[%s1619_s5] sm:$0x3] }
 0x1fc   : > { %v1518_v10 = vperm.slane %v581_v3, 0  ;;  %v1520_v11 = vperm.slane %v581_v3, 1 }
 0x1fd   : > { %v619_v37 = vmul.f32 %v1499_v35, %v1499_v35  ;;  %v620_v38 = vmul.f32 %v1501_v36, %v1501_v36 }
 0x1ff   : > { %v632_v39 = vadd.f32 %v620_v38, %v619_v37 }
 0x200   : > { %v597_v40 = vpop.xlane.xlu2 %596 }
 0x201   : > { %v602_v41 = vmul.f32 0.00390625, %v597_v40  ;;  %633 = vadd.xlane.f32.xlu2 %v632_v39 }
 0x203   : > { %v1507_v44 = vsub.f32 %v547_v7, %v602_v41  ;;  %v1509_v45 = vsub.f32 %v579_v8, %v602_v41  ;;  %v582_v7 = vld [vmem:[#allocation10] sm:$0x3] }
 0x204   : > { %v1522_v16 = vperm.slane %v582_v7, 0  ;;  %v1524_v17 = vperm.slane %v582_v7, 1 }
 0x205   : > { %v621_v46 = vmul.f32 %v1507_v44, %v1507_v44  ;;  %v622_v47 = vmul.f32 %v1509_v45, %v1509_v45 }
 0x207   : > { %v635_v48 = vadd.f32 %v622_v47, %v621_v46 }
 0x209   : > { %636 = vadd.xlane.f32.xlu0 %v635_v48 }
 0x25c   : > { %v625_v49 = vpop.xlane.xlu2 %624 }
 0x25d   : > { %v638_v50 = vmul.f32 0.00390625, %v625_v49 }
 0x25f   : > { %v643_v51 = vadd.f32 1e-05, %v638_v50 }
 0x261   : > { %1006 = vrsqrt.f32 %v643_v51  ;;  %vm654_vm1 = vweird.f32 %v643_v51 }
 0x264   : > { %v628_v54 = vpop.xlane.xlu0 %627 }
 0x265   : > { %v639_v55 = vmul.f32 0.00390625, %v628_v54 }
 0x267   : > { %v1007_v56 = vpop.eup %1006  ;;  %v644_v57 = vadd.f32 1e-05, %v639_v55 }
 0x268   : > { %v649_v58 = vmul.f32 %v1007_v56, %v643_v51  ;;  %vm655_vm0 = vweird.f32 %v1007_v56 }
 0x269   : > { %1008 = vrsqrt.f32 %v644_v57  ;;  %vm656_vm2 = vmor %vm654_vm1, %vm655_vm0  ;;  %vm664_vm4 = vweird.f32 %v644_v57 }
 0x26a   : > { %v650_v59 = vmul.f32 %v1007_v56, %v649_v58 }
 0x26c   : > { %v651_v60 = vmul.f32 0.5, %v650_v59  ;;  %v631_v61 = vpop.xlane.xlu1 %630 }
 0x26d   : > { %v640_v2 = vmul.f32 0.00390625, %v631_v61 }
 0x26e   : > { %v652_v4 = vsub.f32 1.5, %v651_v60 }
 0x26f   : > { %v1009_v5 = vpop.eup %1008  ;;  %v645_v6 = vadd.f32 1e-05, %v640_v2 }
 0x270   : > { %v653_v8 = vmul.f32 %v1007_v56, %v652_v4  ;;  %v659_v9 = vmul.f32 %v1009_v5, %v644_v57  ;;  %vm665_vm3 = vweird.f32 %v1009_v5 }
 0x271   : > { %1010 = vrsqrt.f32 %v645_v6  ;;  %vm666_vm5 = vmor %vm664_vm4, %vm665_vm3  ;;  %vm674_vm7 = vweird.f32 %v645_v6 }
 0x272   : > { %v657_v14 = vsel %vm656_vm2, %v1007_v56, %v653_v8  ;;  %v660_v15 = vmul.f32 %v1009_v5, %v659_v9 }
 0x273   : > { %v698_v18 = vmul.f32 %v657_v14, %v1475_v12  ;;  %v699_v21 = vmul.f32 %v657_v14, %v1477_v13 }
 0x274   : > { %v661_v22 = vmul.f32 0.5, %v660_v15  ;;  %v634_v23 = vpop.xlane.xlu2 %633 }
 0x275   : > { %v713_v24 = vmul.f32 %v1518_v10, %v698_v18  ;;  %v714_v25 = vmul.f32 %v1520_v11, %v699_v21  ;;  %v641_v28 = vmul.f32 0.00390625, %v634_v23 }
 0x276   : > { %v662_v29 = vsub.f32 1.5, %v661_v22 }
 0x277   : > { %v1011_v30 = vpop.eup %1010  ;;  %v728_v31 = vadd.f32 %v1522_v16, %v713_v24  ;;  %v729_v34 = vadd.f32 %v1524_v17, %v714_v25  ;;  %v646_v37 = vadd.f32 1e-05, %v641_v28 }
 0x278   : > { %v663_v38 = vmul.f32 %v1009_v5, %v662_v29  ;;  %v669_v12 = vmul.f32 %v1011_v30, %v645_v6  ;;  %vm675_vm6 = vweird.f32 %v1011_v30 }
 0x279   : > { %v738_v13 = vadd.f32 %v728_v31, %v1433_v32  ;;  %v739_v39 = vadd.f32 %v729_v34, %v1436_v33  ;;  %1012 = vrsqrt.f32 %v646_v37  ;;  %vm676_vm8 = vmor %vm674_vm7, %vm675_vm6  ;;  %vm684_vm10 = vweird.f32 %v646_v37 }
 0x27a   : > { %v667_v40 = vsel %vm666_vm5, %v1009_v5, %v663_v38  ;;  %v670_v41 = vmul.f32 %v1011_v30, %v669_v12 }
 0x27b   : > { %748 = vst [vmem:[%s1536_s18] sm:$0xff] %v738_v13  ;;  %v700_v46 = vmul.f32 %v667_v40, %v1483_v19  ;;  %v701_v47 = vmul.f32 %v667_v40, %v1485_v20 }
 0x27c   : > { %749 = vst [vmem:[%s1536_s18 + $0x8] sm:$0xff] %v739_v39  ;;  %v671_v48 = vmul.f32 0.5, %v670_v41  ;;  %v637_v49 = vpop.xlane.xlu0 %636 }
 0x27d   : > { %v715_v32 = vmul.f32 %v1518_v10, %v700_v46  ;;  %v716_v33 = vmul.f32 %v1520_v11, %v701_v47  ;;  %v642_v50 = vmul.f32 0.00390625, %v637_v49 }
 0x27e   : > { %v672_v51 = vsub.f32 1.5, %v671_v48 }
 0x27f   : > { %v1013_v54 = vpop.eup %1012  ;;  %v730_v55 = vadd.f32 %v1522_v16, %v715_v32  ;;  %v731_v56 = vadd.f32 %v1524_v17, %v716_v33  ;;  %v647_v19 = vadd.f32 1e-05, %v642_v50 }
 0x280   : > { %v673_v57 = vmul.f32 %v1011_v30, %v672_v51  ;;  %v679_v20 = vmul.f32 %v1013_v54, %v646_v37  ;;  %vm685_vm9 = vweird.f32 %v1013_v54 }
 0x281   : > { %v740_v58 = vadd.f32 %v730_v55, %v1441_v42  ;;  %v741_v59 = vadd.f32 %v731_v56, %v1444_v43  ;;  %1014 = vrsqrt.f32 %v647_v19  ;;  %vm686_vm11 = vmor %vm684_vm10, %vm685_vm9  ;;  %vm694_vm13 = vweird.f32 %v647_v19 }
 0x282   : > { %v677_v60 = vsel %vm676_vm8, %v1011_v30, %v673_v57  ;;  %v680_v61 = vmul.f32 %v1013_v54, %v679_v20 }
 0x283   : > { %750 = vst [vmem:[%s1536_s18 + $0x10] sm:$0xff] %v740_v58  ;;  %v702_v2 = vmul.f32 %v677_v60, %v1491_v26  ;;  %v703_v3 = vmul.f32 %v677_v60, %v1493_v27 }
 0x284   : > { %751 = vst [vmem:[%s1536_s18 + $0x18] sm:$0xff] %v741_v59  ;;  %v681_v4 = vmul.f32 0.5, %v680_v61 }
 0x285   : > { %v717_v5 = vmul.f32 %v1518_v10, %v702_v2  ;;  %v718_v6 = vmul.f32 %v1520_v11, %v703_v3 }
 0x286   : > { %v682_v7 = vsub.f32 1.5, %v681_v4 }
 0x287   : > { %v1015_v42 = vpop.eup %1014  ;;  %v732_v43 = vadd.f32 %v1522_v16, %v717_v5  ;;  %v733_v8 = vadd.f32 %v1524_v17, %v718_v6 }
 0x288   : > { %v683_v9 = vmul.f32 %v1013_v54, %v682_v7  ;;  %v689_v26 = vmul.f32 %v1015_v42, %v647_v19  ;;  %vm695_vm12 = vweird.f32 %v1015_v42 }
 0x289   : > { %v742_v27 = vadd.f32 %v732_v43, %v1449_v52  ;;  %v743_v14 = vadd.f32 %v733_v8, %v1452_v53  ;;  %vm696_vm14 = vmor %vm694_vm13, %vm695_vm12 }
 0x28a   : > { %v687_v15 = vsel %vm686_vm11, %v1013_v54, %v683_v9  ;;  %v690_v18 = vmul.f32 %v1015_v42, %v689_v26 }
 0x28b   : > { %752 = vst [vmem:[%s1536_s18 + $0x20] sm:$0xff] %v742_v27  ;;  %v704_v21 = vmul.f32 %v687_v15, %v1499_v35  ;;  %v705_v22 = vmul.f32 %v687_v15, %v1501_v36 }
 0x28c   : > { %753 = vst [vmem:[%s1536_s18 + $0x28] sm:$0xff] %v743_v14  ;;  %v691_v23 = vmul.f32 0.5, %v690_v18 }
 0x28d   : > { %v719_v24 = vmul.f32 %v1518_v10, %v704_v21  ;;  %v720_v25 = vmul.f32 %v1520_v11, %v705_v22 }
 0x28e   : > { %v692_v52 = vsub.f32 1.5, %v691_v23 }
 0x28f   : > { %v734_v53 = vadd.f32 %v1522_v16, %v719_v24  ;;  %v735_v28 = vadd.f32 %v1524_v17, %v720_v25 }
 0x290   : > { %v693_v29 = vmul.f32 %v1015_v42, %v692_v52 }
 0x291   : > { %v744_v35 = vadd.f32 %v734_v53, %v1457_v62  ;;  %v745_v36 = vadd.f32 %v735_v28, %v1460_v63 }
 0x292   : > { %v697_v30 = vsel %vm696_vm14, %v1015_v42, %v693_v29 }
 0x293   : > { %754 = vst [vmem:[%s1536_s18 + $0x30] sm:$0xff] %v744_v35  ;;  %v706_v31 = vmul.f32 %v697_v30, %v1507_v44  ;;  %v707_v34 = vmul.f32 %v697_v30, %v1509_v45 }
 0x294   : > { %755 = vst [vmem:[%s1536_s18 + $0x38] sm:$0xff] %v745_v36 }
 0x295   : > { %v721_v37 = vmul.f32 %v1518_v10, %v706_v31  ;;  %v722_v62 = vmul.f32 %v1520_v11, %v707_v34 }
 0x297   : > { %v736_v63 = vadd.f32 %v1522_v16, %v721_v37  ;;  %v737_v38 = vadd.f32 %v1524_v17, %v722_v62 }
 0x299   : > { %v746_v44 = vadd.f32 %v736_v63, %v1465_v0  ;;  %v747_v45 = vadd.f32 %v737_v38, %v1468_v1 }
 0x29b   : > { %756 = vst [vmem:[%s1536_s18 + $0x40] sm:$0xff] %v746_v44 }
 0x29c   : > { %757 = vst [vmem:[%s1536_s18 + $0x48] sm:$0xff] %v747_v45 }
 0x29d   : > { %1193 = shalt.err (!%p1190_p10)
}
 0x29e   : > { %s1250_s2 = smov 256   ;;  %s1251_s23 = smov 16  }
 0x29f   : > { %930 = dma.vmem_to_hbm [thread:$0]  (%p1379_p3), %s773_s17, 1280, %s775_s19, %s759_s14, %s1250_s2, %s1250_s2, %s1251_s23  }
 0x2a0 PF: > { %s789_s16 = sand.u32 1, %s1228_s24   ;;  %p1638_p12 = scmp.ge.s32.totalorder %s1240_s27, 2 }
 0x2a1   : > { %s790_s18 = scalar_lea.sflag [#allocation4], %s789_s16 }
 0x2a2   : > { %p950_p13 = pnand %p1638_p12, %p1327_p6 }
 0x2a4   : > { %p951_p0 = pneg %p950_p13 }
 0x2a6   : > { %1223 = dma.done.wait (%p951_p0), %s790_s18, 1280  }
 0x2a7   : > { %1225 = vsyncadd (%p951_p0), %s790_s18, 4294966016  ;;  %p22_p5 = scmp.ge.s32.totalorder %s1369_s21, 4   ;;  %s1639_s24 = smov %s1232_s25 }
 0x2a8   : > { %s1640_s25 = smov %s1236_s26  ;;  %s1641_s26 = smov %s1385_s11 }
 0x2a9   : > { %s1642_s27 = smov %s1369_s21  ;;  %24 = sbr.rel (!%p22_p5) target bundleno = 11 (0xb), region = 109 }
 0x2ae   :  { %796 = vsyncpa [#allocation3], 1 }
 0x2af   :  { %798 = vsyncpa [#allocation3 + $0x1], 1 }
 0x2b0   :  { %799 = vsyncpa [#allocation6], 1 }
 0x2b1   :  { %800 = vsyncpa [#allocation9], 1 }
 0x2b2   :  { %801 = vsyncpa [#allocation4], 1 }
 0x2b3   :  { %803 = vsyncpa [#allocation4 + $0x1], 1 }

</bundles_post_ra>
